<compile_context>
chip_gen: v7x
topology: tpu7x:2x2x1
jax: 0.10.0
libtpu: 0.0.40
codegen_flags: <defaults>
</compile_context>

<pallas_src>
import math
from functools import partial

import jax
import jax.numpy as jnp
from jax.experimental import pallas as pl
from jax.experimental.pallas import tpu as pltpu


def _round_up(x, m):
    return ((x + m - 1) // m) * m


def _embed_vmem_kernel(ids_ref, table_ref, out_ref, *, scale, token_block, unroll):
    """Small-table fast path: table resident in VMEM, gather via dynamic row slices.

    ids_ref:   (N_pad,)          int32 token ids in SMEM (scalar prefetch, pre-clamped)
    table_ref: (V, D)            embedding table, resident VMEM block (grid-invariant)
    out_ref:   (token_block, D)  output tile (VMEM, pipelined)
    """
    base = pl.program_id(0) * token_block
    n_chunks = token_block // unroll

    @pl.loop(0, n_chunks)
    def _gather(c):
        t0 = pl.multiple_of(c * unroll, unroll)
        for u in range(unroll):                     # unrolled: scheduler co-issues
            t = t0 + u
            row = ids_ref[base + t]
            out_ref[pl.ds(t, 1), :] = (
                table_ref[pl.ds(row, 1), :].astype(jnp.float32) * scale
            ).astype(out_ref.dtype)


def _embed_hbm_gather_kernel(ids_ref, table_ref, out_ref, sem,
                             *, scale, token_block, unroll):
    """Large-table path: per-row HBM DMAs straight into the output tile.

    ids_ref:   (N_pad,)          int32 token ids in SMEM (scalar prefetch, pre-clamped)
    table_ref: (V, D)            embedding table, left in HBM (pl.ANY)
    out_ref:   (token_block, D)  output tile (VMEM, pipelined) -- DMA destination
    sem:       single DMA semaphore shared by all row copies of this tile
    """
    base = pl.program_id(0) * token_block
    n_chunks = token_block // unroll

    # Issue one row DMA per token, directly into out_ref (no gather scratch).
    # The inner Python loop partially unrolls descriptor builds so they co-issue
    # across the scalar + misc slots.
    @pl.loop(0, n_chunks)
    def _issue(c):
        t0 = pl.multiple_of(c * unroll, unroll)
        for u in range(unroll):
            t = t0 + u
            row = ids_ref[base + t]                 # clamped in the wrapper
            pltpu.make_async_copy(
                table_ref.at[pl.ds(row, 1), :],
                out_ref.at[pl.ds(t, 1), :],
                sem,
            ).start()

    # Single coarse wait: every row copy is a (1, D) slab of the same dtype
    # signalling the same byte-counting DMA semaphore, so one wait sized
    # (token_block, D) consumes exactly token_block completions (and drains the
    # semaphore to zero).  The src here is a dummy of matching shape.
    pltpu.make_async_copy(
        table_ref.at[pl.ds(0, token_block), :],
        out_ref,
        sem,
    ).wait()

    # Scale in f32, cast back to the table dtype.
    out_ref[...] = (out_ref[...].astype(jnp.float32) * scale).astype(out_ref.dtype)


def embeddings_forward(x, table, *, token_block=256,
                       fast_path_bytes=2 * 1024 * 1024, unroll=8):
    """Pallas equivalent of Embeddings.forward: lut(x) * sqrt(d_model)."""
    V, D = table.shape
    lead_shape = tuple(x.shape)
    N = int(math.prod(lead_shape)) if lead_shape else 1
    itemsize = table.dtype.itemsize
    table_bytes = V * D * itemsize
    scale = float(math.sqrt(D))

    use_vmem = table_bytes <= fast_path_bytes

    # ---- choose the per-step token tile ------------------------------------
    tb = min(int(token_block), _round_up(N, 8))
    tb = max(8, (tb // 8) * 8)                       # sublane multiple of 8
    if not use_vmem:
        # The coarse DMA wait uses the first `tb` table rows as a dummy src.
        assert V >= 8, "HBM gather path expects vocab >= 8"
        tb = max(8, min(tb, (V // 8) * 8))
    # Keep (double-buffered output tile + resident table, double-buffered) well
    # under the scoped-VMEM defaults on every generation (v5e 16 MiB scoped
    # default, v7x 64 MiB physical / 32 MiB scoped default).
    vmem_budget = 12 * 1024 * 1024
    while tb > 8 and (2 * tb * D * itemsize
                      + (2 * table_bytes if use_vmem else 0)) > vmem_budget:
        tb //= 2
    tb = max(8, (tb // 8) * 8)
    unroll = max(1, math.gcd(int(unroll), tb))

    n_pad = _round_up(N, tb)
    num_blocks = n_pad // tb

    # Clamp ids once, vectorized, outside the kernel (frees the scalar slot).
    # torch.nn.Embedding would raise on out-of-range ids; an unchecked gather
    # would be an OOB HBM read -- clamp instead.  Padded slots gather row 0.
    ids = jnp.clip(x.reshape(N).astype(jnp.int32), 0, V - 1)
    if n_pad != N:
        ids = jnp.pad(ids, (0, n_pad - N))

    out_spec = pl.BlockSpec((tb, D), lambda i, ids: (i, 0))

    if use_vmem:
        kernel = partial(_embed_vmem_kernel, scale=scale, token_block=tb,
                         unroll=unroll)
        table_spec = pl.BlockSpec((V, D), lambda i, ids: (0, 0))   # VMEM-resident
        scratch = []
    else:
        kernel = partial(_embed_hbm_gather_kernel, scale=scale, token_block=tb,
                         unroll=unroll)
        table_spec = pl.BlockSpec(memory_space=pl.ANY)             # stays in HBM
        scratch = [pltpu.SemaphoreType.DMA(())]

    out_flat = pl.pallas_call(
        kernel,
        out_shape=jax.ShapeDtypeStruct((n_pad, D), table.dtype),
        grid_spec=pltpu.PrefetchScalarGridSpec(
            num_scalar_prefetch=1,                   # ids -> SMEM
            grid=(num_blocks,),
            in_specs=[table_spec],
            out_specs=out_spec,
            scratch_shapes=scratch,
        ),
        compiler_params=pltpu.CompilerParams(
            dimension_semantics=("parallel",)),      # shard token blocks over TCs
    )(ids, table)

    if n_pad != N:
        out_flat = out_flat[:N]
    return out_flat.reshape(*lead_shape, D)


if __name__ == "__main__":
    # Small, deterministic setup consistent with the module:
    #   d_model = 128, vocab = 64, x: (batch=2, seq=8) token ids.
    d_model, vocab = 128, 64
    batch, seq = 2, 8

    key = jax.random.PRNGKey(0)
    k_tab, k_ids = jax.random.split(key)

    # nn.Embedding default init is N(0, 1).
    lut_weight = jax.random.normal(k_tab, (vocab, d_model), dtype=jnp.float32)
    x = jax.random.randint(k_ids, (batch, seq), 0, vocab, dtype=jnp.int32)

    ref = jnp.take(lut_weight, x, axis=0) * math.sqrt(d_model)

    # Path 1: small-table fast path (table resident in VMEM).
    out_fast = jax.block_until_ready(embeddings_forward(x, lut_weight))
    assert out_fast.shape == (batch, seq, d_model)
    assert out_fast.dtype == jnp.float32
    assert jnp.allclose(out_fast, ref, atol=1e-5, rtol=1e-5), "VMEM path mismatch"

    # Path 2: force the HBM row-gather path (used for production vocab sizes).
    out_gather = jax.block_until_ready(
        embeddings_forward(x, lut_weight, fast_path_bytes=0))
    assert out_gather.shape == (batch, seq, d_model)
    assert jnp.allclose(out_gather, ref, atol=1e-5, rtol=1e-5), "HBM path mismatch"

    print("KERNEL_OK")
</pallas_src>

<mosaic_0001>
module attributes {stable_mosaic.version = 11 : i64} {
  func.func @_embed_vmem_kernel(%arg0: i32, %arg1: memref<16xi32, #tpu.memory_space<smem>>, %arg2: memref<64x128xf32, #tpu.memory_space<vmem>>, %arg3: memref<16x128xf32, #tpu.memory_space<vmem>>) attributes {dimension_semantics = [#tpu.dimension_semantics<parallel>], iteration_bounds = array<i64: 1>, scalar_prefetch = 1 : i64, scratch_operands = 0 : i64, tpu.core_type = #tpu.core_type<tc>, window_params = [{pipeline_mode = #tpu.pipeline_mode<synchronous>, transform_indices = @transform_0, window_bounds = array<i64: 64, 128>}, {transform_indices = @transform_1, window_bounds = array<i64: 16, 128>}]} {
    %c16_i32 = arith.constant 16 : i32
    %0 = arith.muli %arg0, %c16_i32 : i32
    %c0_i32 = arith.constant 0 : i32
    %c2_i32 = arith.constant 2 : i32
    %1 = arith.addi %c0_i32, %c2_i32 : i32
    %c1_i32 = arith.constant 1 : i32
    scf.for %arg4 = %c0_i32 to %1 step %c1_i32  : i32 {
      %c1_i32_1 = arith.constant 1 : i32
      %2 = arith.muli %arg4, %c1_i32_1 : i32
      %c0_i32_2 = arith.constant 0 : i32
      %3 = arith.addi %c0_i32_2, %2 : i32
      %c8_i32 = arith.constant 8 : i32
      %4 = arith.muli %3, %c8_i32 : i32
      %5 = tpu.assume_multiple %4, 8 : i32
      %c0_i32_3 = arith.constant 0 : i32
      %6 = arith.addi %5, %c0_i32_3 : i32
      %7 = arith.addi %0, %6 : i32
      %8 = arith.index_cast %7 : i32 to index
      %9 = memref.load %arg1[%8] : memref<16xi32, #tpu.memory_space<smem>>
      %10 = arith.index_cast %9 : i32 to index
      %c0 = arith.constant 0 : index
      %11 = vector.load %arg2[%10, %c0] : memref<64x128xf32, #tpu.memory_space<vmem>>, vector<1x128xf32>
      %cst = arith.constant 11.3137083 : f32
      %12 = vector.broadcast %cst : f32 to vector<1x128xf32>
      %13 = arith.mulf %11, %12 : vector<1x128xf32>
      %14 = arith.index_cast %6 : i32 to index
      %c0_4 = arith.constant 0 : index
      %15 = vector.load %arg3[%14, %c0_4] : memref<16x128xf32, #tpu.memory_space<vmem>>, vector<1x128xf32>
      tpu.vector_store %arg3[%14, %c0_4], %13 {strides = array<i32>} : memref<16x128xf32, #tpu.memory_space<vmem>>, vector<1x128xf32>,
      %c1_i32_5 = arith.constant 1 : i32
      %16 = arith.addi %5, %c1_i32_5 : i32
      %17 = arith.addi %0, %16 : i32
      %18 = arith.index_cast %17 : i32 to index
      %19 = memref.load %arg1[%18] : memref<16xi32, #tpu.memory_space<smem>>
      %20 = arith.index_cast %19 : i32 to index
      %c0_6 = arith.constant 0 : index
      %21 = vector.load %arg2[%20, %c0_6] : memref<64x128xf32, #tpu.memory_space<vmem>>, vector<1x128xf32>
      %cst_7 = arith.constant 11.3137083 : f32
      %22 = vector.broadcast %cst_7 : f32 to vector<1x128xf32>
      %23 = arith.mulf %21, %22 : vector<1x128xf32>
      %24 = arith.index_cast %16 : i32 to index
      %c0_8 = arith.constant 0 : index
      %25 = vector.load %arg3[%24, %c0_8] : memref<16x128xf32, #tpu.memory_space<vmem>>, vector<1x128xf32>
      tpu.vector_store %arg3[%24, %c0_8], %23 {strides = array<i32>} : memref<16x128xf32, #tpu.memory_space<vmem>>, vector<1x128xf32>,
      %c2_i32_9 = arith.constant 2 : i32
      %26 = arith.addi %5, %c2_i32_9 : i32
      %27 = arith.addi %0, %26 : i32
      %28 = arith.index_cast %27 : i32 to index
      %29 = memref.load %arg1[%28] : memref<16xi32, #tpu.memory_space<smem>>
      %30 = arith.index_cast %29 : i32 to index
      %c0_10 = arith.constant 0 : index
      %31 = vector.load %arg2[%30, %c0_10] : memref<64x128xf32, #tpu.memory_space<vmem>>, vector<1x128xf32>
      %cst_11 = arith.constant 11.3137083 : f32
      %32 = vector.broadcast %cst_11 : f32 to vector<1x128xf32>
      %33 = arith.mulf %31, %32 : vector<1x128xf32>
      %34 = arith.index_cast %26 : i32 to index
      %c0_12 = arith.constant 0 : index
      %35 = vector.load %arg3[%34, %c0_12] : memref<16x128xf32, #tpu.memory_space<vmem>>, vector<1x128xf32>
      tpu.vector_store %arg3[%34, %c0_12], %33 {strides = array<i32>} : memref<16x128xf32, #tpu.memory_space<vmem>>, vector<1x128xf32>,
      %c3_i32 = arith.constant 3 : i32
      %36 = arith.addi %5, %c3_i32 : i32
      %37 = arith.addi %0, %36 : i32
      %38 = arith.index_cast %37 : i32 to index
      %39 = memref.load %arg1[%38] : memref<16xi32, #tpu.memory_space<smem>>
      %40 = arith.index_cast %39 : i32 to index
      %c0_13 = arith.constant 0 : index
      %41 = vector.load %arg2[%40, %c0_13] : memref<64x128xf32, #tpu.memory_space<vmem>>, vector<1x128xf32>
      %cst_14 = arith.constant 11.3137083 : f32
      %42 = vector.broadcast %cst_14 : f32 to vector<1x128xf32>
      %43 = arith.mulf %41, %42 : vector<1x128xf32>
      %44 = arith.index_cast %36 : i32 to index
      %c0_15 = arith.constant 0 : index
      %45 = vector.load %arg3[%44, %c0_15] : memref<16x128xf32, #tpu.memory_space<vmem>>, vector<1x128xf32>
      tpu.vector_store %arg3[%44, %c0_15], %43 {strides = array<i32>} : memref<16x128xf32, #tpu.memory_space<vmem>>, vector<1x128xf32>,
      %c4_i32 = arith.constant 4 : i32
      %46 = arith.addi %5, %c4_i32 : i32
      %47 = arith.addi %0, %46 : i32
      %48 = arith.index_cast %47 : i32 to index
      %49 = memref.load %arg1[%48] : memref<16xi32, #tpu.memory_space<smem>>
      %50 = arith.index_cast %49 : i32 to index
      %c0_16 = arith.constant 0 : index
      %51 = vector.load %arg2[%50, %c0_16] : memref<64x128xf32, #tpu.memory_space<vmem>>, vector<1x128xf32>
      %cst_17 = arith.constant 11.3137083 : f32
      %52 = vector.broadcast %cst_17 : f32 to vector<1x128xf32>
      %53 = arith.mulf %51, %52 : vector<1x128xf32>
      %54 = arith.index_cast %46 : i32 to index
      %c0_18 = arith.constant 0 : index
      %55 = vector.load %arg3[%54, %c0_18] : memref<16x128xf32, #tpu.memory_space<vmem>>, vector<1x128xf32>
      tpu.vector_store %arg3[%54, %c0_18], %53 {strides = array<i32>} : memref<16x128xf32, #tpu.memory_space<vmem>>, vector<1x128xf32>,
      %c5_i32 = arith.constant 5 : i32
      %56 = arith.addi %5, %c5_i32 : i32
      %57 = arith.addi %0, %56 : i32
      %58 = arith.index_cast %57 : i32 to index
      %59 = memref.load %arg1[%58] : memref<16xi32, #tpu.memory_space<smem>>
      %60 = arith.index_cast %59 : i32 to index
      %c0_19 = arith.constant 0 : index
      %61 = vector.load %arg2[%60, %c0_19] : memref<64x128xf32, #tpu.memory_space<vmem>>, vector<1x128xf32>
      %cst_20 = arith.constant 11.3137083 : f32
      %62 = vector.broadcast %cst_20 : f32 to vector<1x128xf32>
      %63 = arith.mulf %61, %62 : vector<1x128xf32>
      %64 = arith.index_cast %56 : i32 to index
      %c0_21 = arith.constant 0 : index
      %65 = vector.load %arg3[%64, %c0_21] : memref<16x128xf32, #tpu.memory_space<vmem>>, vector<1x128xf32>
      tpu.vector_store %arg3[%64, %c0_21], %63 {strides = array<i32>} : memref<16x128xf32, #tpu.memory_space<vmem>>, vector<1x128xf32>,
      %c6_i32 = arith.constant 6 : i32
      %66 = arith.addi %5, %c6_i32 : i32
      %67 = arith.addi %0, %66 : i32
      %68 = arith.index_cast %67 : i32 to index
      %69 = memref.load %arg1[%68] : memref<16xi32, #tpu.memory_space<smem>>
      %70 = arith.index_cast %69 : i32 to index
      %c0_22 = arith.constant 0 : index
      %71 = vector.load %arg2[%70, %c0_22] : memref<64x128xf32, #tpu.memory_space<vmem>>, vector<1x128xf32>
      %cst_23 = arith.constant 11.3137083 : f32
      %72 = vector.broadcast %cst_23 : f32 to vector<1x128xf32>
      %73 = arith.mulf %71, %72 : vector<1x128xf32>
      %74 = arith.index_cast %66 : i32 to index
      %c0_24 = arith.constant 0 : index
      %75 = vector.load %arg3[%74, %c0_24] : memref<16x128xf32, #tpu.memory_space<vmem>>, vector<1x128xf32>
      tpu.vector_store %arg3[%74, %c0_24], %73 {strides = array<i32>} : memref<16x128xf32, #tpu.memory_space<vmem>>, vector<1x128xf32>,
      %c7_i32 = arith.constant 7 : i32
      %76 = arith.addi %5, %c7_i32 : i32
      %77 = arith.addi %0, %76 : i32
      %78 = arith.index_cast %77 : i32 to index
      %79 = memref.load %arg1[%78] : memref<16xi32, #tpu.memory_space<smem>>
      %80 = arith.index_cast %79 : i32 to index
      %c0_25 = arith.constant 0 : index
      %81 = vector.load %arg2[%80, %c0_25] : memref<64x128xf32, #tpu.memory_space<vmem>>, vector<1x128xf32>
      %cst_26 = arith.constant 11.3137083 : f32
      %82 = vector.broadcast %cst_26 : f32 to vector<1x128xf32>
      %83 = arith.mulf %81, %82 : vector<1x128xf32>
      %84 = arith.index_cast %76 : i32 to index
      %c0_27 = arith.constant 0 : index
      %85 = vector.load %arg3[%84, %c0_27] : memref<16x128xf32, #tpu.memory_space<vmem>>, vector<1x128xf32>
      tpu.vector_store %arg3[%84, %c0_27], %83 {strides = array<i32>} : memref<16x128xf32, #tpu.memory_space<vmem>>, vector<1x128xf32>,
    }
    %c2_i32_0 = arith.constant 2 : i32
    return
  }
  func.func @transform_0(%arg0: i32, %arg1: memref<16xi32, #tpu.memory_space<smem>>) -> (i32, i32) {
    %c0_i32 = arith.constant 0 : i32
    %c0_i32_0 = arith.constant 0 : i32
    %c0_i32_1 = arith.constant 0 : i32
    return %c0_i32, %c0_i32_0 : i32, i32
  }
  func.func @transform_1(%arg0: i32, %arg1: memref<16xi32, #tpu.memory_space<smem>>) -> (i32, i32) {
    %c0_i32 = arith.constant 0 : i32
    %c0_i32_0 = arith.constant 0 : i32
    return %arg0, %c0_i32 : i32, i32
  }
}

</mosaic_0001>

<bundles_post_ra>
// kernel: tpu_custom_call.1
= control target key start
LH: loop header
LB: loop body
LE: loop exit
PB: predicated region body
PF: predicated region fallthrough
CT: control target
= control target key end

     0   :  { %s319_s0 = inlined_call_operand.hbm [shape: s32[16], index: 0, kind: input, shape index: {}]   ;;  %s320_s1 = inlined_call_operand.hbm [shape: f32[64,128], index: 1, kind: input, shape index: {}]   ;;  %s321_s2 = inlined_call_operand.hbm [shape: f32[16,128], index: 2, kind: output, shape index: {}]  }
   0x1   :  { %s180_s11 = scalar_lea.hbm %s319_s0, 16 }
   0x2   :  { %p181_p0 = scmp.ne.s32.totalorder %s319_s0, %s180_s11  ;;  %p184_p1 = scmp.lt.u32.totalorder %s180_s11, %s319_s0 }
   0x4   :  { %p186_p2 = pnand %p184_p1, %p181_p0 }
   0x6   :  { %189 = shalt.err (!%p186_p2)  }
   0x7   :  { %s248_s16 = smov [#allocation3]  }
   0x8   :  { %8 = dma.hbm_to_smem %s319_s0, 16, %s248_s16, [#allocation2] }
   0x9   :  { %238 = dma.done.wait [#allocation2], 16 }
   0xa   :  { %239 = vsyncadd [#allocation2], 4294967280 }
   0xb   :  { %10 = sfence }
   0xc   :  { %11 = vsyncpa [#allocation5], 0 }
   0xd   :  { %12 = vsyncpa [#allocation6], 0  ;;  %s249_s19 = smov [#allocation4]   ;;  %s190_s23 = scalar_lea.hbm %s320_s1, 1024 }
   0xe   :  { %s18_s20 = sshll.u32 %s249_s19, 4  ;;  %p191_p3 = scmp.ne.s32.totalorder %s320_s1, %s190_s23  ;;  %s19_s20 = int_to_ptr.vmem [resolvable:$true] %s18_s20 }
   0xf   :  { %p194_p4 = scmp.lt.u32.totalorder %s190_s23, %s320_s1 }
  0x11   :  { %p196_p5 = pnand %p194_p4, %p191_p3 }
  0x13   :  { %199 = shalt.err (!%p196_p5)
}
  0x14   :  { %s200_s0 = scalar_lea.vmem %s19_s20, 1024  ;;  %p205_p7 = scmp.lt.s32.totalorder %s19_s20, %s19_s20 }
  0x15   :  { %p201_p6 = scmp.ne.s32.totalorder %s19_s20, %s200_s0  ;;  %p206_p8 = scmp.lt.s32.totalorder %s200_s0, %s200_s0 }
  0x17   :  { %p207_p9 = por %p206_p8, %p205_p7 }
  0x19   :  { %p208_p10 = pnand %p207_p9, %p201_p6 }
  0x1b   :  { %211 = shalt.err (!%p208_p10)
}
  0x1c   :  { %s250_s28 = smov 128   ;;  %s251_s29 = smov 8  }
  0x1d   :  { %24 = dma.hbm_to_vmem [thread:$0]  %s320_s1, 1024, %s19_s20, [#allocation5], %s250_s28, %s250_s28, %s251_s29  }
  0x1e   :  { %240 = dma.done.wait [#allocation5], 1024  }
  0x1f   :  { %241 = vsyncadd [#allocation5], 4294966272  ;;  %s295_s4 = smov 0  }
  0x20 LB: > { %s152_s5 = sshll.u32 %s246_s4, 3  ;;  %s34_s4 = sadd.s32 1, %s246_s4   ;;  %s246_s4 = sphi %s295_s4, %s34_s4  }
  0x21   : > { %s37_s6 = sld [smem:[#allocation3 + %s152_s5]]  ;;  %s43_s7 = sadd.s32 1, %s152_s5 }
  0x22   : > { %s51_s8 = sadd.s32 2, %s152_s5  ;;  %s45_s9 = sld [smem:[#allocation3 + %s43_s7]] }
  0x23   : > { %s53_s10 = sld [smem:[#allocation3 + %s51_s8]]  ;;  %s59_s11 = sadd.s32 3, %s152_s5 }
  0x24   : > { %s67_s12 = sadd.s32 4, %s152_s5  ;;  %s61_s13 = sld [smem:[#allocation3 + %s59_s11]] }
  0x25   : > { %s69_s1 = sld [smem:[#allocation3 + %s67_s12]]  ;;  %s75_s14 = sadd.s32 5, %s152_s5 }
  0x26   : > { %s83_s15 = sadd.s32 6, %s152_s5  ;;  %s77_s16 = sld [smem:[#allocation3 + %s75_s14]] }
  0x27   : > { %s38_s17 = scalar_lea.vmem [#allocation4], %s37_s6  ;;  %s85_s18 = sld [smem:[#allocation3 + %s83_s15]] }
  0x28   : > { %v39_v0 = vld [vmem:[%s38_s17] sm:$0x1]  ;;  %s91_s19 = sadd.s32 7, %s152_s5  ;;  %s46_s20 = scalar_lea.vmem [#allocation4], %s45_s9 }
  0x29   : > { %v40_v1 = vmul.f32 11.313708, %v39_v0  ;;  %v47_v2 = vld [vmem:[%s46_s20] sm:$0x1]  ;;  %s54_s21 = scalar_lea.vmem [#allocation4], %s53_s10  ;;  %s93_s22 = sld [smem:[#allocation3 + %s91_s19]] }
  0x2a   : > { %v55_v3 = vld [vmem:[%s54_s21] sm:$0x1]  ;;  %s41_s23 = scalar_lea.vmem [#allocation7], %s152_s5  ;;  %v48_v4 = vmul.f32 11.313708, %v47_v2  ;;  %s62_s24 = scalar_lea.vmem [#allocation4], %s61_s13 }
  0x2b   : > { %42 = vst [vmem:[%s41_s23] sm:$0x1] %v40_v1  ;;  %v56_v5 = vmul.f32 11.313708, %v55_v3  ;;  %v63_v6 = vld [vmem:[%s62_s24] sm:$0x1]  ;;  %s70_s25 = scalar_lea.vmem [#allocation4], %s69_s1 }
  0x2c   : > { %v71_v7 = vld [vmem:[%s70_s25] sm:$0x1]  ;;  %154 = vst [vmem:[%s41_s23 + $0x1] sm:$0x1] %v48_v4  ;;  %v64_v8 = vmul.f32 11.313708, %v63_v6 }
  0x2d   : > { %156 = vst [vmem:[%s41_s23 + $0x2] sm:$0x1] %v56_v5  ;;  %v72_v9 = vmul.f32 11.313708, %v71_v7  ;;  %s78_s26 = scalar_lea.vmem [#allocation4], %s77_s16  ;;  %s86_s27 = scalar_lea.vmem [#allocation4], %s85_s18 }
  0x2e   : > { %v79_v10 = vld [vmem:[%s78_s26] sm:$0x1]  ;;  %158 = vst [vmem:[%s41_s23 + $0x3] sm:$0x1] %v64_v8  ;;  %p31_p11 = scmp.ge.s32.totalorder %s34_s4, 2  }
  0x2f   : > { %160 = vst [vmem:[%s41_s23 + $0x4] sm:$0x1] %v72_v9  ;;  %v80_v11 = vmul.f32 11.313708, %v79_v10  ;;  %v87_v12 = vld [vmem:[%s86_s27] sm:$0x1] }
  0x30   : > { %v88_v13 = vmul.f32 11.313708, %v87_v12  ;;  %s94_s0 = scalar_lea.vmem [#allocation4], %s93_s22  ;;  %33 = sbr.rel (!%p31_p11) target bundleno = 32 (0x20), region = 51 }
  0x31   : > { %162 = vst [vmem:[%s41_s23 + $0x5] sm:$0x1] %v80_v11  ;;  %v95_v14 = vld [vmem:[%s94_s0] sm:$0x1]  ;;  %s252_s30 = smov (%p31_p11), [#allocation7]  }
  0x32   : > { %164 = vst [vmem:[%s41_s23 + $0x6] sm:$0x1] %v88_v13  ;;  %v96_v15 = vmul.f32 11.313708, %v95_v14  ;;  %s104_s3 = sshll.u32 (%p31_p11), %s252_s30, 4  ;;  %s105_s3 = int_to_ptr.vmem [resolvable:$true] %s104_s3 }
  0x33   :  { %s212_s5 = scalar_lea.vmem (%p31_p11), %s105_s3, 256  ;;  %p217_p13 = scmp.lt.s32.totalorder (%p31_p11), %s105_s3, %s105_s3 }
  0x34   : > { %166 = vst [vmem:[%s41_s23 + $0x7] sm:$0x1] %v96_v15  ;;  %p213_p12 = scmp.ne.s32.totalorder (%p31_p11), %s105_s3, %s212_s5  ;;  %p218_p0 = scmp.lt.s32.totalorder (%p31_p11), %s212_s5, %s212_s5 }
  0x36   :  { %p219_p1 = por (%p31_p11), %p218_p0, %p217_p13 }
  0x38   :  { %p220_p2 = pnand %p219_p1, %p213_p12 }
  0x3a   :  { %223 = shalt.err (!%p220_p2)
}
  0x3b   :  { %s224_s8 = scalar_lea.hbm %s321_s2, 256 }
  0x3c   :  { %p225_p3 = scmp.ne.s32.totalorder %s321_s2, %s224_s8  ;;  %p228_p4 = scmp.lt.u32.totalorder %s224_s8, %s321_s2 }
  0x3e   :  { %p230_p5 = pnand %p228_p4, %p225_p3 }
  0x40   :  { %233 = shalt.err (!%p230_p5)
}
  0x41   :  { %110 = dma.vmem_to_hbm [thread:$0]  %s105_s3, 256, %s321_s2, [#allocation6], %s250_s28, %s250_s28, %s251_s29  }
  0x42   :  { %242 = dma.done.wait [#allocation6], 256  }
  0x43   :  { %243 = vsyncadd [#allocation6], 4294967040 }
  0x44   :  { %114 = vsyncpa [#allocation5], 1 }
  0x45   :  { %115 = vsyncpa [#allocation6], 1 }

</bundles_post_ra>
